<compile_context>
chip_gen: v5e
topology: v5e:2x2
jax: 0.10.0
libtpu: 0.0.40
codegen_flags: <defaults>
</compile_context>

<pallas_src>
import functools

import jax
import jax.numpy as jnp
from jax.experimental import pallas as pl
from jax.experimental.pallas import tpu as pltpu


def _round_up(x: int, m: int) -> int:
    return ((x + m - 1) // m) * m


def _make_fused_mlp_kernel(num_layers: int):
    """One batch tile, all heads fused: one matmul per layer, whole MLP in VMEM."""

    def kernel(*refs):
        x_ref = refs[0]
        out_ref = refs[-1]
        wb = refs[1:-1]                          # w0, b0, w1, b1, ...

        h = x_ref[...]                           # [tile, in_dim]  (f32 in HBM/VMEM)
        for l in range(num_layers):
            w = wb[2 * l][...]                   # [f_in, f_out]  (bf16 or f32)
            b = wb[2 * l + 1][...]               # [1,    f_out]  (always f32)
            if h.dtype != w.dtype:               # cast MXU operand only (in-kernel)
                h = h.astype(w.dtype)
            h = jnp.dot(h, w, preferred_element_type=jnp.float32) + b
            if l < num_layers - 1:               # last ReLU popped, like the module
                h = jnp.maximum(h, 0.0)
        out_ref[...] = h.astype(out_ref.dtype)   # lane-dense [tile, 128k] store

    return kernel


def prepare_params(head_params, mxu_dtype=jnp.float32):
    """One-time weight prep: fuse the per-head MLPs into one wide / block-diag MLP.

    head_params: list (per head) of list of (W [out, in] f32, b [out] f32)
                 (PyTorch nn.Linear layout).
    Returns (ws, bs): per-layer fused arrays
        W_0 [in_dim,  F_0]   (heads concatenated along the output dim)
        W_l [F_{l-1}, F_l]   (block-diagonal over heads, l >= 1)
        b_l [1,       F_l]   (f32, so bias-add / ReLU run in f32)
    where F_l = round_up(num_heads * h_l, 128)  (zero-padded lanes).
    """
    num_heads = len(head_params)
    num_layers = len(head_params[0])
    in_dim = head_params[0][0][0].shape[1]
    h_dims = [head_params[0][l][0].shape[0] for l in range(num_layers)]
    fused = [_round_up(num_heads * d, 128) for d in h_dims]

    ws, bs = [], []
    prev_fused, prev_h = in_dim, None
    for l in range(num_layers):
        d = h_dims[l]
        w = jnp.zeros((prev_fused, fused[l]), jnp.float32)
        b = jnp.zeros((1, fused[l]), jnp.float32)
        for k in range(num_heads):
            wk = head_params[k][l][0].T          # [d_in, d]
            bk = head_params[k][l][1]            # [d]
            col = k * d
            if l == 0:
                w = w.at[:, col:col + d].set(wk)
            else:
                row = k * prev_h
                w = w.at[row:row + prev_h, col:col + d].set(wk)
            b = b.at[0, col:col + d].set(bk)
        ws.append(w.astype(mxu_dtype))
        bs.append(b)                             # keep f32
        prev_fused, prev_h = fused[l], d
    return tuple(ws), tuple(bs)


@functools.partial(jax.jit, static_argnames=("num_heads", "out_dim", "tile_b"))
def fc_multihead_forward(x, ws, bs, *, num_heads, out_dim, tile_b=512):
    """x: [B, in_dim] f32.  ws/bs: output of prepare_params.  Returns [B, H, out_dim]."""
    num_layers = len(ws)
    B, in_dim = x.shape
    f_last = int(ws[-1].shape[-1])
    mxu_bf16 = ws[0].dtype == jnp.bfloat16

    # Batch tile: multiple of 16 sublanes for bf16 packing, 8 for f32; prefer the
    # largest tile that covers the batch, but keep >=2 grid steps when possible so
    # v7x can shard the "parallel" axis across its two TensorCores.
    align = 16 if mxu_bf16 else 8
    tile = _round_up(min(tile_b, B), align)
    b_pad = _round_up(B, tile)
    if b_pad // tile < 2 and tile >= 2 * align:
        tile = _round_up(tile // 2, align)
        b_pad = _round_up(B, tile)

    if b_pad != B:
        x = jnp.pad(x, ((0, b_pad - B), (0, 0)))   # x stays f32 in HBM; bf16 cast is in-kernel

    grid = (b_pad // tile,)

    in_specs = [pl.BlockSpec((tile, in_dim), lambda bt: (bt, 0))]
    for l in range(num_layers):
        f_in, f_out = int(ws[l].shape[0]), int(ws[l].shape[1])
        in_specs.append(pl.BlockSpec((f_in, f_out), lambda bt: (0, 0)))   # resident weights
        in_specs.append(pl.BlockSpec((1, f_out), lambda bt: (0, 0)))      # resident biases
    out_specs = pl.BlockSpec((tile, f_last), lambda bt: (bt, 0))

    # Advisory cost estimate (x streamed once, padded output writeback).
    flops = 2 * b_pad * sum(int(w.shape[0]) * int(w.shape[1]) for w in ws)
    bytes_accessed = (b_pad * in_dim * x.dtype.itemsize
                      + sum(int(w.size) * w.dtype.itemsize for w in ws)
                      + sum(int(b.size) * 4 for b in bs)
                      + b_pad * f_last * 4)

    # VMEM budget: double-buffered x tile + resident weights/biases + double-buffered
    # output tile + activation temporaries.  Cap at 64 MiB (v7x physical VMEM).
    f_max = max(int(w.shape[1]) for w in ws)
    vmem_est = (2 * tile * in_dim * 4
                + sum(int(w.size) * w.dtype.itemsize for w in ws)
                + sum(int(b.size) * 4 for b in bs)
                + 2 * tile * f_last * 4
                + 2 * tile * f_max * 4)
    vmem_limit = int(min(max(2 * vmem_est, 32 << 20), 64 << 20))

    out = pl.pallas_call(
        _make_fused_mlp_kernel(num_layers),
        out_shape=jax.ShapeDtypeStruct((b_pad, f_last), jnp.float32),
        grid=grid,
        in_specs=in_specs,
        out_specs=out_specs,
        compiler_params=pltpu.CompilerParams(
            dimension_semantics=("parallel",),
            vmem_limit_bytes=vmem_limit),
        cost_estimate=pl.CostEstimate(flops=flops, transcendentals=0,
                                      bytes_accessed=bytes_accessed),
    )(x, *[a for pair in zip(ws, bs) for a in pair])

    # [b_pad, F_last] -> [B, num_heads, out_dim]  (free reshape + narrow slice,
    # equivalent to torch.cat(head_outs, dim=1)); no transpose needed.
    return out[:B, :num_heads * out_dim].reshape(B, num_heads, out_dim)


def init_head_params(key, in_dim, num_heads, h):
    """Deterministic per-head nn.Linear-style init (uniform +-1/sqrt(fan_in))."""
    dims = (in_dim,) + tuple(h)
    heads = []
    for hk in jax.random.split(key, num_heads):
        layer_keys = jax.random.split(hk, 2 * len(h))
        layers = []
        for l in range(len(h)):
            fan_in, fan_out = dims[l], dims[l + 1]
            bound = float(fan_in) ** -0.5
            w = jax.random.uniform(layer_keys[2 * l], (fan_out, fan_in),
                                   jnp.float32, -bound, bound)
            b = jax.random.uniform(layer_keys[2 * l + 1], (fan_out,),
                                   jnp.float32, -bound, bound)
            layers.append((w, b))
        heads.append(layers)
    return heads


def reference_forward(x, head_params):
    """Pure-JAX mirror of the PyTorch forward, for the sanity check."""
    outs = []
    for layers in head_params:
        hcur = x
        for l, (w, b) in enumerate(layers):
            hcur = hcur @ w.T + b
            if l < len(layers) - 1:
                hcur = jax.nn.relu(hcur)
        outs.append(hcur[:, None, :])
    return jnp.concatenate(outs, axis=1)


if __name__ == "__main__":
    # Small shapes consistent with the module.
    B = 64            # batch
    IN_DIM = 20       # in_dim
    NUM_HEADS = 3     # num_heads
    H = (32, 16)      # hidden sizes h; output per head = h[-1]

    key = jax.random.PRNGKey(0)
    kx, kp = jax.random.split(key)
    x = jax.random.normal(kx, (B, IN_DIM), dtype=jnp.float32)
    head_params = init_head_params(kp, IN_DIM, NUM_HEADS, H)
    ref = reference_forward(x, head_params)

    # f32 MXU path.
    ws, bs = prepare_params(head_params)                       # one-time fused weight prep
    out = jax.block_until_ready(
        fc_multihead_forward(x, ws, bs, num_heads=NUM_HEADS, out_dim=H[-1]))
    assert out.shape == (B, NUM_HEADS, H[-1])
    assert jnp.allclose(out, ref, atol=1e-4, rtol=1e-4), "f32 mismatch vs reference"

    # bf16 MXU operands (v6e/v7x fast path): x stays f32 in HBM, cast in-kernel;
    # f32 accumulation + f32 bias/ReLU.  Per-layer re-cast compounds rounding a
    # little with depth; a 5% relative tolerance covers these shallow MLPs.
    ws16, bs16 = prepare_params(head_params, mxu_dtype=jnp.bfloat16)
    out16 = jax.block_until_ready(
        fc_multihead_forward(x, ws16, bs16, num_heads=NUM_HEADS, out_dim=H[-1]))
    err = jnp.max(jnp.abs(out16 - ref)) / jnp.maximum(1.0, jnp.max(jnp.abs(ref)))
    assert err < 0.05, f"bf16 path error too large: {err}"

    print("KERNEL_OK")
</pallas_src>

<mosaic_0001>
module attributes {stable_mosaic.version = 11 : i64} {
  func.func @kernel(%arg0: i32, %arg1: memref<32x20xf32, #tpu.memory_space<vmem>>, %arg2: memref<20x128xf32, #tpu.memory_space<vmem>>, %arg3: memref<1x128xf32, #tpu.memory_space<vmem>>, %arg4: memref<128x128xf32, #tpu.memory_space<vmem>>, %arg5: memref<1x128xf32, #tpu.memory_space<vmem>>, %arg6: memref<32x128xf32, #tpu.memory_space<vmem>>) attributes {dimension_semantics = [#tpu.dimension_semantics<parallel>], iteration_bounds = array<i64: 2>, scalar_prefetch = 0 : i64, scratch_operands = 0 : i64, tpu.core_type = #tpu.core_type<tc>, window_params = [{transform_indices = @transform_0, window_bounds = array<i64: 32, 20>}, {pipeline_mode = #tpu.pipeline_mode<synchronous>, transform_indices = @transform_1, window_bounds = array<i64: 20, 128>}, {pipeline_mode = #tpu.pipeline_mode<synchronous>, transform_indices = @transform_2, window_bounds = array<i64: 1, 128>}, {pipeline_mode = #tpu.pipeline_mode<synchronous>, transform_indices = @transform_3, window_bounds = array<i64: 128, 128>}, {pipeline_mode = #tpu.pipeline_mode<synchronous>, transform_indices = @transform_4, window_bounds = array<i64: 1, 128>}, {transform_indices = @transform_5, window_bounds = array<i64: 32, 128>}]} {
    %c0 = arith.constant 0 : index
    %c0_0 = arith.constant 0 : index
    %0 = vector.load %arg1[%c0, %c0_0] : memref<32x20xf32, #tpu.memory_space<vmem>>, vector<32x20xf32>
    %c0_1 = arith.constant 0 : index
    %c0_2 = arith.constant 0 : index
    %1 = vector.load %arg2[%c0_1, %c0_2] : memref<20x128xf32, #tpu.memory_space<vmem>>, vector<20x128xf32>
    %c0_3 = arith.constant 0 : index
    %c0_4 = arith.constant 0 : index
    %2 = vector.load %arg3[%c0_3, %c0_4] : memref<1x128xf32, #tpu.memory_space<vmem>>, vector<1x128xf32>
    %cst = arith.constant dense<0.000000e+00> : vector<32x128xf32>
    %3 = tpu.matmul %0, %1, %cst {dimension_numbers = #tpu.dot_dimension_numbers<[1], [0], [0], [1], [0, 0, 1, 1], [], []>} : vector<32x20xf32>, vector<20x128xf32>, vector<32x128xf32> -> vector<32x128xf32>
    %4 = vector.broadcast %2 : vector<1x128xf32> to vector<32x128xf32>
    %5 = arith.addf %3, %4 : vector<32x128xf32>
    %cst_5 = arith.constant 0.000000e+00 : f32
    %6 = vector.broadcast %cst_5 : f32 to vector<32x128xf32>
    %7 = arith.maximumf %5, %6 : vector<32x128xf32>
    %c0_6 = arith.constant 0 : index
    %c0_7 = arith.constant 0 : index
    %8 = vector.load %arg4[%c0_6, %c0_7] : memref<128x128xf32, #tpu.memory_space<vmem>>, vector<128x128xf32>
    %c0_8 = arith.constant 0 : index
    %c0_9 = arith.constant 0 : index
    %9 = vector.load %arg5[%c0_8, %c0_9] : memref<1x128xf32, #tpu.memory_space<vmem>>, vector<1x128xf32>
    %cst_10 = arith.constant dense<0.000000e+00> : vector<32x128xf32>
    %10 = tpu.matmul %7, %8, %cst_10 {dimension_numbers = #tpu.dot_dimension_numbers<[1], [0], [0], [1], [0, 0, 1, 1], [], []>} : vector<32x128xf32>, vector<128x128xf32>, vector<32x128xf32> -> vector<32x128xf32>
    %11 = vector.broadcast %9 : vector<1x128xf32> to vector<32x128xf32>
    %12 = arith.addf %10, %11 : vector<32x128xf32>
    %c0_11 = arith.constant 0 : index
    %c0_12 = arith.constant 0 : index
    %13 = vector.load %arg6[%c0_11, %c0_12] : memref<32x128xf32, #tpu.memory_space<vmem>>, vector<32x128xf32>
    tpu.vector_store %arg6[%c0_11, %c0_12], %12 {strides = array<i32>} : memref<32x128xf32, #tpu.memory_space<vmem>>, vector<32x128xf32>,
    return
  }
  func.func @transform_0(%arg0: i32) -> (i32, i32) {
    %c0_i32 = arith.constant 0 : i32
    %c0_i32_0 = arith.constant 0 : i32
    return %arg0, %c0_i32 : i32, i32
  }
  func.func @transform_1(%arg0: i32) -> (i32, i32) {
    %c0_i32 = arith.constant 0 : i32
    %c0_i32_0 = arith.constant 0 : i32
    %c0_i32_1 = arith.constant 0 : i32
    return %c0_i32, %c0_i32_0 : i32, i32
  }
  func.func @transform_2(%arg0: i32) -> (i32, i32) {
    %c0_i32 = arith.constant 0 : i32
    %c0_i32_0 = arith.constant 0 : i32
    %c0_i32_1 = arith.constant 0 : i32
    return %c0_i32, %c0_i32_0 : i32, i32
  }
  func.func @transform_3(%arg0: i32) -> (i32, i32) {
    %c0_i32 = arith.constant 0 : i32
    %c0_i32_0 = arith.constant 0 : i32
    %c0_i32_1 = arith.constant 0 : i32
    return %c0_i32, %c0_i32_0 : i32, i32
  }
  func.func @transform_4(%arg0: i32) -> (i32, i32) {
    %c0_i32 = arith.constant 0 : i32
    %c0_i32_0 = arith.constant 0 : i32
    %c0_i32_1 = arith.constant 0 : i32
    return %c0_i32, %c0_i32_0 : i32, i32
  }
  func.func @transform_5(%arg0: i32) -> (i32, i32) {
    %c0_i32 = arith.constant 0 : i32
    %c0_i32_0 = arith.constant 0 : i32
    return %arg0, %c0_i32 : i32, i32
  }
}

</mosaic_0001>

<bundles_post_ra>
// kernel: fc_multihead_forward.1
= control target key start
LH: loop header
LB: loop body
LE: loop exit
PB: predicated region body
PF: predicated region fallthrough
CT: control target
= control target key end

     0   :  { %10 = vsyncpa [#allocation3], 0  ;;  %s591_s18 = smov 0   ;;  %s643_s0 = inlined_call_operand.vmem [shape: f32[64,20], index: 0, kind: input, shape index: {}]   ;;  %s644_s1 = inlined_call_operand.vmem [shape: f32[20,128], index: 1, kind: input, shape index: {}]   ;;  %s645_s2 = inlined_call_operand.vmem [shape: f32[1,128], index: 2, kind: input, shape index: {}]   ;;  %s646_s3 = inlined_call_operand.hbm [shape: f32[128,128], index: 3, kind: input, shape index: {}]   ;;  %s647_s4 = inlined_call_operand.vmem [shape: f32[1,128], index: 4, kind: input, shape index: {}]   ;;  %s648_s5 = inlined_call_operand.vmem [shape: f32[64,128], index: 5, kind: output, shape index: {}]  }
   0x1 LB: > { %s174_s21 = sshll.u32 %s646_s3, 4  ;;  %s427_s22 = sadd.s32 4294967295, %s556_s18   ;;  %s556_s18 = sphi %s591_s18, %s16_s18   ;;  %s175_s21 = int_to_ptr.hbm [resolvable:$true] %s174_s21 }
   0x2   : > { %p429_p0 = scmp.ge.s32.totalorder %s556_s18, 1  ;;  %p157_p1 = scmp.lt.s32.totalorder %s556_s18, 3 }
   0x3   : > { %p501_p2 = scmp.eq.s32.totalorder %s427_s22, 0  ;;  %s558_s23 = smov [#allocation2]  }
   0x4   : > { %p158_p3 = pnand %p429_p0, %p157_p1  ;;  %s176_s24 = sshll.u32 %s558_s23, 4  ;;  %s177_s24 = int_to_ptr.vmem [resolvable:$true] %s176_s24 }
   0x5   : > { %s559_s25 = smov 128   ;;  %s560_s26 = smov 8  }
   0x6   : > { %p497_p4 = pneg %p158_p3  ;;  %204 = sbr.rel (%p158_p3) target bundleno = 308 (0x134), region = 40 }
   0x8   : > { %p498_p5 = pnand %p501_p2, %p497_p4 }
   0xa   : > { %500 = dma.hbm_to_vmem [thread:$0]  (!%p498_p5), %s175_s21, 2048, %s177_s24, [#allocation3], %s559_s25, %s559_s25, %s560_s26  }
   0xb   : > { %551 = dma.done.wait (%p501_p2), [#allocation3], 2048  }
   0xc   : > { %553 = vsyncadd (%p501_p2), [#allocation3], 4294965248  ;;  %s434_s27 = sshll.u32 %s427_s22, 2  ;;  %vm269_vm0 = vcmask 1043456   ;;  %v251_v0 = vld [vmem:[%s644_s1 + $0x10] sm:$0xf] }
   0xd   : > { %p234_p6 = scmp.lt.s32.totalorder %s434_s27, 7  ;;  %v250_v1 = vld [vmem:[%s644_s1 + $0x8] sm:$0xff]  ;;  %438 = vmatpush.msk.msra.mxu0 %vm269_vm0, %v251_v0  ;;  %v249_v2 = vld [vmem:[%s644_s1] sm:$0xff]  ;;  %v321_v3 = vld [vmem:[#allocation2 + $0x78] sm:$0xff]  ;;  %vm256_vm1 = vcmask 162816  }
   0xe   : > { %445 = vmatpush.msra.mxu1 %v321_v3  ;;  %v320_v5 = vld [vmem:[#allocation2 + $0x70] sm:$0xff]  ;;  %446 = vmatpush.msra.mxu2 %v321_v3  ;;  %v319_v6 = vld [vmem:[#allocation2 + $0x68] sm:$0xff]  ;;  %v318_v7 = vld [vmem:[#allocation2 + $0x60] sm:$0xff] }
   0xf   : > { %s650_s27 = smov (!%p234_p6, %s434_s27), 7  ;;  %287 = vmatpush.msra.mxu0 %v250_v1  ;;  %447 = vmatpush.msra.mxu3 %v321_v3  ;;  %v317_v8 = vld [vmem:[#allocation2 + $0x58] sm:$0xff]  ;;  %v316_v10 = vld [vmem:[#allocation2 + $0x50] sm:$0xff]  ;;  %v315_v11 = vld [vmem:[#allocation2 + $0x48] sm:$0xff] }
  0x10   : > { %s435_s28 = sshll.u32 %s650_s27, 3  ;;  %448 = vmatpush.msra.mxu1 %v320_v5  ;;  %449 = vmatpush.msra.mxu2 %v320_v5  ;;  %v314_v12 = vld [vmem:[#allocation2 + $0x40] sm:$0xff]  ;;  %v313_v13 = vld [vmem:[#allocation2 + $0x38] sm:$0xff]  ;;  %v312_v15 = vld [vmem:[#allocation2 + $0x30] sm:$0xff] }
  0x11   : > { %s616_s10 = scalar_lea.vmem %s643_s0, %s435_s28  ;;  %288 = vmatpush.msra.mxu0 %v249_v2  ;;  %450 = vmatpush.msra.mxu3 %v320_v5  ;;  %v311_v16 = vld [vmem:[#allocation2 + $0x28] sm:$0xff]  ;;  %v310_v17 = vld [vmem:[#allocation2 + $0x20] sm:$0xff]  ;;  %v309_v18 = vld [vmem:[#allocation2 + $0x18] sm:$0xff]  ;;  %s243_s20 = scalar_lea.vmem %s648_s5, %s435_s28 }
  0x12   : > { %v245_v4 = vld [vmem:[%s616_s10] sm:$0xff]  ;;  %451 = vmatpush.msra.mxu1 %v319_v6  ;;  %452 = vmatpush.msra.mxu2 %v319_v6  ;;  %v246_v9 = vld [vmem:[%s616_s10 + $0x8] sm:$0xff]  ;;  %v247_v14 = vld [vmem:[%s616_s10 + $0x10] sm:$0xff] }
  0x13   : > { %439 = vmatmul.msk.f32.vlgmr.msra.gmra.mxu0 %vm256_vm1, %v245_v4  ;;  %453 = vmatpush.msra.mxu3 %v319_v6  ;;  %v248_v19 = vld [vmem:[%s616_s10 + $0x18] sm:$0xff]  ;;  %v308_v20 = vld [vmem:[#allocation2 + $0x10] sm:$0xff]  ;;  %v307_v21 = vld [vmem:[#allocation2 + $0x8] sm:$0xff] }
  0x14   : > { %326 = vmatpush.msrb.mxu0 %v321_v3  ;;  %454 = vmatpush.msra.mxu1 %v318_v7  ;;  %v306_v22 = vld [vmem:[#allocation2] sm:$0xff] }
  0x15   : > { %455 = vmatpush.msra.mxu2 %v318_v7  ;;  %456 = vmatpush.msra.mxu3 %v318_v7  ;;  %v514_v23 = vld [vmem:[%s645_s2] ss:$0 sm:$0xff] }
  0x16   : > { %327 = vmatpush.msrb.mxu0 %v320_v5  ;;  %457 = vmatpush.msra.mxu1 %v317_v8  ;;  %v515_v36 = vld [vmem:[%s647_s4] ss:$0 sm:$0xff] }
  0x17   : > { %458 = vmatpush.msra.mxu2 %v317_v8  ;;  %459 = vmatpush.msra.mxu3 %v317_v8 }
  0x18   : > { %328 = vmatpush.msrb.mxu0 %v319_v6  ;;  %460 = vmatpush.msra.mxu1 %v316_v10 }
  0x19   : > { %461 = vmatpush.msra.mxu2 %v316_v10  ;;  %462 = vmatpush.msra.mxu3 %v316_v10 }
  0x1a   : > { %329 = vmatpush.msrb.mxu0 %v318_v7  ;;  %463 = vmatpush.msra.mxu1 %v315_v11 }
  0x1b   : > { %440 = vmatmul.msk.f32.gmra.mxu0 %vm256_vm1, %v246_v9  ;;  %464 = vmatpush.msra.mxu2 %v315_v11 }
  0x1c   : > { %330 = vmatpush.msrb.mxu0 %v317_v8  ;;  %466 = vmatpush.msra.mxu1 %v314_v12 }
  0x1d   : > { %467 = vmatpush.msra.mxu2 %v314_v12  ;;  %465 = vmatpush.msra.mxu3 %v315_v11 }
  0x1e   : > { %331 = vmatpush.msrb.mxu0 %v316_v10  ;;  %469 = vmatpush.msra.mxu1 %v313_v13 }
  0x1f   : > { %470 = vmatpush.msra.mxu2 %v313_v13  ;;  %468 = vmatpush.msra.mxu3 %v314_v12 }
  0x20   : > { %332 = vmatpush.msrb.mxu0 %v315_v11  ;;  %472 = vmatpush.msra.mxu1 %v312_v15 }
  0x21   : > { %473 = vmatpush.msra.mxu2 %v312_v15  ;;  %471 = vmatpush.msra.mxu3 %v313_v13 }
  0x22   : > { %333 = vmatpush.msrb.mxu0 %v314_v12  ;;  %475 = vmatpush.msra.mxu1 %v311_v16 }
  0x23   : > { %441 = vmatmul.msk.f32.gmra.mxu0 %vm256_vm1, %v247_v14  ;;  %476 = vmatpush.msra.mxu2 %v311_v16 }
  0x24   : > { %334 = vmatpush.msrb.mxu0 %v313_v13  ;;  %478 = vmatpush.msra.mxu1 %v310_v17 }
  0x25   : > { %479 = vmatpush.msra.mxu2 %v310_v17  ;;  %474 = vmatpush.msra.mxu3 %v312_v15 }
  0x26   : > { %335 = vmatpush.msrb.mxu0 %v312_v15  ;;  %481 = vmatpush.msra.mxu1 %v309_v18 }
  0x27   : > { %482 = vmatpush.msra.mxu2 %v309_v18  ;;  %477 = vmatpush.msra.mxu3 %v311_v16 }
  0x28   : > { %336 = vmatpush.msrb.mxu0 %v311_v16  ;;  %484 = vmatpush.msra.mxu1 %v308_v20 }
  0x29   : > { %480 = vmatpush.msra.mxu3 %v310_v17  ;;  %485 = vmatpush.msra.mxu2 %v308_v20 }
  0x2a   : > { %337 = vmatpush.msrb.mxu0 %v310_v17  ;;  %487 = vmatpush.msra.mxu1 %v307_v21 }
  0x2b   : > { %442 = vmatmul.msk.f32.gmra.mxu0 %vm256_vm1, %v248_v19  ;;  %483 = vmatpush.msra.mxu3 %v309_v18 }
  0x2c   : > { %338 = vmatpush.msrb.mxu0 %v309_v18  ;;  %488 = vmatpush.msra.mxu2 %v307_v21 }
  0x2d   : > { %486 = vmatpush.msra.mxu3 %v308_v20  ;;  %490 = vmatpush.msra.mxu1 %v306_v22 }
  0x2e   : > { %339 = vmatpush.msrb.mxu0 %v308_v20  ;;  %491 = vmatpush.msra.mxu2 %v306_v22 }
  0x2f   : > { %489 = vmatpush.msra.mxu3 %v307_v21 }
  0x30   : > { %340 = vmatpush.msrb.mxu0 %v307_v21 }
  0x31   : > { %492 = vmatpush.msra.mxu3 %v306_v22 }
  0x32   : > { %341 = vmatpush.msrb.mxu0 %v306_v22 }
  0x90   : > { %v290_v24 = vpop.f32.mrf.mxu0 }
  0x91   : > { %v291_v25 = vadd.f32 %v514_v23, %v290_v24 }
  0x93   : > { %v302_v26 = vmax.f32 %v291_v25, 0.0 }
  0x95   : > { %342 = vmatmul.f32.vlgmr.msrb.gmra.mxu0 %v302_v26 }
  0x98   : > { %v293_v27 = vpop.f32.mrf.mxu0 }
  0x99   : > { %v294_v28 = vadd.f32 %v514_v23, %v293_v27 }
  0x9b   : > { %v303_v29 = vmax.f32 %v294_v28, 0.0 }
  0x9d   : > { %345 = vmatmul.f32.vlgmr.msra.gmra.mxu1 %v303_v29 }
  0xa0   : > { %v296_v30 = vpop.f32.mrf.mxu0 }
  0xa1   : > { %v297_v31 = vadd.f32 %v514_v23, %v296_v30 }
  0xa3   : > { %v304_v32 = vmax.f32 %v297_v31, 0.0 }
  0xa5   : > { %348 = vmatmul.f32.vlgmr.msra.gmra.mxu2 %v304_v32 }
  0xa8   : > { %v299_v33 = vpop.f32.mrf.mxu0 }
  0xa9   : > { %v300_v34 = vadd.f32 %v514_v23, %v299_v33 }
  0xab   : > { %v305_v35 = vmax.f32 %v300_v34, 0.0 }
  0xad   : > { %351 = vmatmul.f32.vlgmr.msra.gmra.mxu3 %v305_v35 }
 0x112   : > { %v343_v37 = vpop.f32.mrf.mxu0 }
 0x113   : > { %v344_v38 = vadd.f32 %v515_v36, %v343_v37 }
 0x115   : > { %355 = vst [vmem:[%s243_s20] sm:$0xff] %v344_v38 }
 0x11a   : > { %v346_v39 = vpop.f32.mrf.mxu1 }
 0x11b   : > { %v347_v40 = vadd.f32 %v515_v36, %v346_v39 }
 0x11d   : > { %356 = vst [vmem:[%s243_s20 + $0x8] sm:$0xff] %v347_v40 }
 0x128   : > { %v349_v41 = vpop.f32.mrf.mxu2 }
 0x129   : > { %v350_v42 = vadd.f32 %v515_v36, %v349_v41 }
 0x12b   : > { %357 = vst [vmem:[%s243_s20 + $0x10] sm:$0xff] %v350_v42 }
 0x130   : > { %v352_v43 = vpop.f32.mrf.mxu3 }
 0x131   : > { %v353_v44 = vadd.f32 %v515_v36, %v352_v43 }
 0x133   : > { %358 = vst [vmem:[%s243_s20 + $0x18] sm:$0xff] %v353_v44 }
 0x134 PF: > { %s16_s18 = sadd.s32 1, %s556_s18  }
 0x135   : > { %p13_p7 = scmp.ge.s32.totalorder %s16_s18, 4  }
 0x137   :  { %15 = sbr.rel (!%p13_p7) target bundleno = 1 (0x1), region = 75 }
 0x13c   :  { %381 = vsyncpa [#allocation3], 1 }
 0x13d   :  { %383 = vsyncpa [#allocation3 + $0x1], 1 }

</bundles_post_ra>
